<compile_context>
chip_gen: v7x
topology: tpu7x:2x2x1
jax: 0.10.0
libtpu: 0.0.40
codegen_flags: <defaults>
</compile_context>

<pallas_src>
import jax
import jax.numpy as jnp
from jax.experimental import pallas as pl
from jax.experimental.pallas import tpu as pltpu


def moe_kernel(count_ref, ids_ref, gate_ref, x_ref, w_ref, gb_ref, o_ref,
               acc_ref):
    b = pl.program_id(0)
    n_e = w_ref.shape[0]

    # f32 accumulator initialized with the gated bias sum_e mask[b,e]*bias_e,
    # broadcast along the lane axis.
    acc_ref[...] = jnp.broadcast_to(gb_ref[0], acc_ref.shape)

    # Spatial tile for this (b, tile); cast once to bf16 for the MXU.
    x = x_ref[0].astype(jnp.bfloat16)

    def body(i, carry):
        e = ids_ref[b * n_e + i]          # compacted active expert id (SMEM)
        g = gate_ref[b * n_e + i]         # its gate value (SMEM, f32)
        # Scale the SMALL (Cout, Cin) operand by the gate (f32 mul), then feed
        # the MXU bf16 operands with f32 accumulation.
        wg = (w_ref[e] * g).astype(jnp.bfloat16)
        acc_ref[...] += jnp.dot(wg, x, preferred_element_type=jnp.float32)
        return carry

    # Loop over only the ACTIVE experts of sample b (dynamic trip count).
    jax.lax.fori_loop(0, count_ref[b], body, 0)

    # Single lane-dense store per (b, tile), emitted in the model dtype.
    o_ref[0] = acc_ref[...].astype(o_ref.dtype)


def _round_up(v, m):
    return -(-v // m) * m


def _vmem_params():
    """Returns (vmem_limit_bytes, tile_budget_bytes), generation-aware."""
    cap = None
    try:
        cap = int(getattr(pltpu.get_tpu_info(), "vmem_capacity_bytes"))
    except Exception:
        cap = None
    if not cap:
        cap = 64 << 20          # conservative (v7x per-TC size) if unavailable
    return int(cap * 0.70), int(cap * 0.45)


def _pick_spatial_tile(hw, c_in, c_out, n_e, *, x_bytes, out_bytes, w_buffers,
                       budget, cap=2048):
    """Largest lane tile (multiple of 128, capped) whose pipelined blocks plus
    the resident (8,128)-padded bf16 weight set fit the VMEM budget."""
    if hw < 128:
        return hw                                   # full-extent block (legal)
    w_bytes = w_buffers * n_e * _round_up(c_out, 8) * _round_up(c_in, 128) * 2
    gb_bytes = 2 * _round_up(c_out, 8) * 128 * 4
    per_lane = (2 * _round_up(c_in, 8) * x_bytes        # double-buffered x
                + 2 * _round_up(c_out, 8) * out_bytes   # double-buffered out
                + _round_up(c_out, 8) * 4)              # f32 acc scratch
    avail = budget - w_bytes - gb_bytes
    # TODO(synk): if the resident weights alone blow the budget (huge expert
    # sets on v7x's 64 MiB/TC), switch to per-expert weight streaming instead
    # of collapsing ts to 128.
    ts_fit = 128 if avail <= 0 else max(128, (avail // per_lane) // 128 * 128)
    return int(min(cap, max(128, (hw // 128) * 128), ts_fit))


def sparse_moe_forward(x_nchw, weights, biases, mask):
    """x_nchw: [B, Cin, H, W]; weights: [E, Cout, Cin]; biases: [E, Cout];
    mask: [B, E] per-sample expert gates.  Returns [B, Cout, H, W]."""
    B, C, H, W = x_nchw.shape
    E, Cout, Cin = weights.shape
    assert Cin == C and mask.shape == (B, E) and biases.shape == (E, Cout)
    hw = H * W
    out_dtype = x_nchw.dtype

    # NCHW is already [B, C, H*W]-contiguous: pure reshape, no transpose and
    # no dtype pass over x (it is cast to bf16 per-tile inside the kernel).
    x3 = x_nchw.reshape(B, C, hw)
    w_bf16 = weights.astype(jnp.bfloat16)

    # Tiny O(B*E) precomputes: compacted active-expert list per sample.
    # (Exact != 0.0 test: softmax gates are all "active"; top-k masks skip.)
    mask_f32 = mask.astype(jnp.float32)
    active = mask_f32 != 0.0
    count = jnp.sum(active, axis=1).astype(jnp.int32)                    # [B]
    e_idx = jnp.arange(E, dtype=jnp.int32)
    order = jnp.argsort(jnp.where(active, e_idx, e_idx + E), axis=1)     # active first
    ids_flat = order.astype(jnp.int32).reshape(B * E)
    gates_flat = jnp.take_along_axis(mask_f32, order, axis=1).reshape(B * E)
    gated_bias = jnp.einsum("be,eo->bo", mask_f32,
                            biases.astype(jnp.float32))[..., None]  # [B,Cout,1]

    vmem_limit, budget = _vmem_params()
    ts = _pick_spatial_tile(hw, Cin, Cout, E,
                            x_bytes=x3.dtype.itemsize,
                            out_bytes=jnp.dtype(out_dtype).itemsize,
                            w_buffers=1, budget=budget)
    # Megacore occupancy (v7x): make sure both TensorCores get work.
    if B * pl.cdiv(hw, ts) < 2 and ts > 128:
        ts = max(128, _round_up(pl.cdiv(hw, 2), 128))
    grid = (B, pl.cdiv(hw, ts))

    def build(weight_pipeline_mode):
        w_kwargs = ({} if weight_pipeline_mode is None
                    else {"pipeline_mode": weight_pipeline_mode})
        return pl.pallas_call(
            moe_kernel,
            out_shape=jax.ShapeDtypeStruct((B, Cout, hw), out_dtype),
            grid_spec=pltpu.PrefetchScalarGridSpec(
                num_scalar_prefetch=3,        # count, ids, gates -> SMEM
                grid=grid,
                in_specs=[
                    # x spatial tile (lane-dense), reused across experts
                    pl.BlockSpec((1, C, ts), lambda b, s, *_: (b, 0, s)),
                    # all expert weights, VMEM-resident (constant block index)
                    pl.BlockSpec((E, Cout, Cin), lambda b, s, *_: (0, 0, 0),
                                 **w_kwargs),
                    # gated-bias column for sample b
                    pl.BlockSpec((1, Cout, 1), lambda b, s, *_: (b, 0, 0)),
                ],
                out_specs=pl.BlockSpec((1, Cout, ts),
                                       lambda b, s, *_: (b, 0, s)),
                scratch_shapes=[pltpu.VMEM((Cout, ts), jnp.float32)],
            ),
            compiler_params=pltpu.CompilerParams(
                dimension_semantics=("parallel", "parallel"),
                vmem_limit_bytes=vmem_limit),
        )

    args = (count, ids_flat, gates_flat, x3, w_bf16, gated_bias)
    try:
        # Constant index_map -> a second weight buffer is pure waste.
        out3 = jax.block_until_ready(build(pl.Buffered(1))(*args))
    except Exception:
        # Fallback if this jax/Mosaic build rejects single-buffered inputs.
        out3 = build(None)(*args)

    return out3.reshape(B, Cout, H, W)


def ref_forward(x, weights, biases, mask):
    # pure-JAX f32 reference mirroring the PyTorch forward (NCHW 1x1 experts)
    outs = []
    for e in range(weights.shape[0]):
        y = jnp.einsum("bchw,oc->bohw", x, weights[e]) \
            + biases[e][None, :, None, None]
        outs.append(y)
    out = jnp.zeros_like(outs[0])
    for e in range(len(outs)):
        out = out + outs[e] * mask[:, e][:, None, None, None]
    return out


if __name__ == "__main__":
    B, C, H, W = 2, 4, 16, 16
    E = 4  # number of experts

    key = jax.random.PRNGKey(0)
    kx, kw, kb, kl = jax.random.split(key, 4)

    x = jax.random.normal(kx, (B, C, H, W), dtype=jnp.float32)
    # expert e = Conv2d(C, C, kernel_size=1); weight stored as [E, Cout, Cin]
    weights = jax.random.normal(kw, (E, C, C), dtype=jnp.float32) * 0.1
    biases = jax.random.normal(kb, (E, C), dtype=jnp.float32) * 0.1
    # (mask, logit) tuple from the gating network; mask drives the weighted sum
    logit = jax.random.normal(kl, (B, E), dtype=jnp.float32)
    mask = jax.nn.softmax(logit, axis=-1)

    # dense (softmax) gates — bf16 MXU operands, f32 accumulation, so the
    # tolerance vs the f32 reference is loosened accordingly.
    out = jax.block_until_ready(sparse_moe_forward(x, weights, biases, mask))
    ref = ref_forward(x, weights, biases, mask)
    assert out.shape == (B, C, H, W)
    assert jnp.allclose(out, ref, rtol=5e-2, atol=5e-2), "mismatch (dense mask)"

    # sparse (top-1) gates: exercises the compacted active-expert skip path
    top1 = jax.nn.one_hot(jnp.argmax(logit, axis=-1), E, dtype=jnp.float32)
    out_s = jax.block_until_ready(sparse_moe_forward(x, weights, biases, top1))
    ref_s = ref_forward(x, weights, biases, top1)
    assert jnp.allclose(out_s, ref_s, rtol=5e-2, atol=5e-2), \
        "mismatch (sparse mask)"

    print("KERNEL_OK")
</pallas_src>

<mosaic_0001>
module attributes {stable_mosaic.version = 11 : i64} {
  func.func @moe_kernel(%arg0: i32, %arg1: i32, %arg2: memref<2xi32, #tpu.memory_space<smem>>, %arg3: memref<8xi32, #tpu.memory_space<smem>>, %arg4: memref<8xf32, #tpu.memory_space<smem>>, %arg5: memref<1x4x256xf32, #tpu.memory_space<vmem>>, %arg6: memref<4x4x4xbf16, #tpu.memory_space<vmem>>, %arg7: memref<1x4x1xf32, #tpu.memory_space<vmem>>, %arg8: memref<1x4x256xf32, #tpu.memory_space<vmem>>, %arg9: memref<4x256xf32, #tpu.memory_space<vmem>>) attributes {dimension_semantics = [#tpu.dimension_semantics<parallel>, #tpu.dimension_semantics<parallel>], iteration_bounds = array<i64: 2, 1>, scalar_prefetch = 3 : i64, scratch_operands = 1 : i64, tpu.core_type = #tpu.core_type<tc>, window_params = [{transform_indices = @transform_0, window_bounds = array<i64: 1, 4, 256>}, {pipeline_mode = #tpu.pipeline_mode<synchronous>, transform_indices = @transform_1, window_bounds = array<i64: 4, 4, 4>}, {transform_indices = @transform_2, window_bounds = array<i64: 1, 4, 1>}, {transform_indices = @transform_3, window_bounds = array<i64: 1, 4, 256>}]} {
    %c0 = arith.constant 0 : index
    %c0_0 = arith.constant 0 : index
    %c0_1 = arith.constant 0 : index
    %0 = vector.load %arg7[%c0, %c0_0, %c0_1] : memref<1x4x1xf32, #tpu.memory_space<vmem>>, vector<1x4x1xf32>
    %1 = vector.shape_cast %0 : vector<1x4x1xf32> to vector<4x1xf32>
    %2 = vector.shape_cast %1 : vector<4x1xf32> to vector<4x1xf32>
    %3 = vector.broadcast %2 : vector<4x1xf32> to vector<4x256xf32>
    %c0_2 = arith.constant 0 : index
    %c0_3 = arith.constant 0 : index
    %4 = vector.load %arg9[%c0_2, %c0_3] : memref<4x256xf32, #tpu.memory_space<vmem>>, vector<4x256xf32>
    tpu.vector_store %arg9[%c0_2, %c0_3], %3 {strides = array<i32>} : memref<4x256xf32, #tpu.memory_space<vmem>>, vector<4x256xf32>,
    %c0_4 = arith.constant 0 : index
    %c0_5 = arith.constant 0 : index
    %c0_6 = arith.constant 0 : index
    %5 = vector.load %arg5[%c0_4, %c0_5, %c0_6] : memref<1x4x256xf32, #tpu.memory_space<vmem>>, vector<1x4x256xf32>
    %6 = vector.shape_cast %5 : vector<1x4x256xf32> to vector<4x256xf32>
    %7 = arith.truncf %6 : vector<4x256xf32> to vector<4x256xbf16>
    %8 = arith.index_cast %arg0 : i32 to index
    %9 = memref.load %arg2[%8] : memref<2xi32, #tpu.memory_space<smem>>
    %c0_i32 = arith.constant 0 : i32
    %c0_i32_7 = arith.constant 0 : i32
    %10 = arith.subi %9, %c0_i32_7 : i32
    %11 = arith.addi %c0_i32_7, %10 : i32
    %c1_i32 = arith.constant 1 : i32
    scf.for %arg10 = %c0_i32_7 to %11 step %c1_i32  : i32 {
      %c4_i32 = arith.constant 4 : i32
      %16 = arith.muli %arg0, %c4_i32 : i32
      %17 = arith.addi %16, %arg10 : i32
      %18 = arith.index_cast %17 : i32 to index
      %19 = memref.load %arg3[%18] : memref<8xi32, #tpu.memory_space<smem>>
      %c4_i32_13 = arith.constant 4 : i32
      %20 = arith.muli %arg0, %c4_i32_13 : i32
      %21 = arith.addi %20, %arg10 : i32
      %22 = arith.index_cast %21 : i32 to index
      %23 = memref.load %arg4[%22] : memref<8xf32, #tpu.memory_space<smem>>
      %24 = arith.index_cast %19 : i32 to index
      %c0_14 = arith.constant 0 : index
      %c0_15 = arith.constant 0 : index
      %25 = vector.load %arg6[%24, %c0_14, %c0_15] : memref<4x4x4xbf16, #tpu.memory_space<vmem>>, vector<1x4x4xbf16>
      %26 = vector.shape_cast %25 : vector<1x4x4xbf16> to vector<4x4xbf16>
      %27 = arith.extf %26 : vector<4x4xbf16> to vector<4x4xf32>
      %28 = vector.broadcast %23 : f32 to vector<4x4xf32>
      %29 = arith.mulf %27, %28 : vector<4x4xf32>
      %30 = arith.truncf %29 : vector<4x4xf32> to vector<4x4xbf16>
      %c0_16 = arith.constant 0 : index
      %c0_17 = arith.constant 0 : index
      %31 = vector.load %arg9[%c0_16, %c0_17] : memref<4x256xf32, #tpu.memory_space<vmem>>, vector<4x256xf32>
      %cst = arith.constant dense<0.000000e+00> : vector<4x256xf32>
      %32 = tpu.matmul %30, %7, %cst {dimension_numbers = #tpu.dot_dimension_numbers<[1], [0], [0], [1], [0, 0, 1, 1], [], []>} : vector<4x4xbf16>, vector<4x256xbf16>, vector<4x256xf32> -> vector<4x256xf32>
      %33 = arith.addf %31, %32 : vector<4x256xf32>
      %c0_18 = arith.constant 0 : index
      %c0_19 = arith.constant 0 : index
      %34 = vector.load %arg9[%c0_18, %c0_19] : memref<4x256xf32, #tpu.memory_space<vmem>>, vector<4x256xf32>
      tpu.vector_store %arg9[%c0_18, %c0_19], %33 {strides = array<i32>} : memref<4x256xf32, #tpu.memory_space<vmem>>, vector<4x256xf32>,
    }
    %c0_8 = arith.constant 0 : index
    %c0_9 = arith.constant 0 : index
    %12 = vector.load %arg9[%c0_8, %c0_9] : memref<4x256xf32, #tpu.memory_space<vmem>>, vector<4x256xf32>
    %c0_10 = arith.constant 0 : index
    %c0_11 = arith.constant 0 : index
    %c0_12 = arith.constant 0 : index
    %13 = vector.load %arg8[%c0_10, %c0_11, %c0_12] : memref<1x4x256xf32, #tpu.memory_space<vmem>>, vector<1x4x256xf32>
    %14 = vector.shape_cast %13 : vector<1x4x256xf32> to vector<4x256xf32>
    %15 = vector.shape_cast %12 : vector<4x256xf32> to vector<1x4x256xf32>
    tpu.vector_store %arg8[%c0_10, %c0_11, %c0_12], %15 {strides = array<i32>} : memref<1x4x256xf32, #tpu.memory_space<vmem>>, vector<1x4x256xf32>,
    return
  }
  func.func @transform_0(%arg0: i32, %arg1: i32, %arg2: memref<2xi32, #tpu.memory_space<smem>>, %arg3: memref<8xi32, #tpu.memory_space<smem>>, %arg4: memref<8xf32, #tpu.memory_space<smem>>) -> (i32, i32, i32) {
    %c0_i32 = arith.constant 0 : i32
    %c0_i32_0 = arith.constant 0 : i32
    return %arg0, %c0_i32, %arg1 : i32, i32, i32
  }
  func.func @transform_1(%arg0: i32, %arg1: i32, %arg2: memref<2xi32, #tpu.memory_space<smem>>, %arg3: memref<8xi32, #tpu.memory_space<smem>>, %arg4: memref<8xf32, #tpu.memory_space<smem>>) -> (i32, i32, i32) {
    %c0_i32 = arith.constant 0 : i32
    %c0_i32_0 = arith.constant 0 : i32
    %c0_i32_1 = arith.constant 0 : i32
    %c0_i32_2 = arith.constant 0 : i32
    return %c0_i32, %c0_i32_0, %c0_i32_1 : i32, i32, i32
  }
  func.func @transform_2(%arg0: i32, %arg1: i32, %arg2: memref<2xi32, #tpu.memory_space<smem>>, %arg3: memref<8xi32, #tpu.memory_space<smem>>, %arg4: memref<8xf32, #tpu.memory_space<smem>>) -> (i32, i32, i32) {
    %c0_i32 = arith.constant 0 : i32
    %c0_i32_0 = arith.constant 0 : i32
    %c0_i32_1 = arith.constant 0 : i32
    return %arg0, %c0_i32, %c0_i32_0 : i32, i32, i32
  }
  func.func @transform_3(%arg0: i32, %arg1: i32, %arg2: memref<2xi32, #tpu.memory_space<smem>>, %arg3: memref<8xi32, #tpu.memory_space<smem>>, %arg4: memref<8xf32, #tpu.memory_space<smem>>) -> (i32, i32, i32) {
    %c0_i32 = arith.constant 0 : i32
    %c0_i32_0 = arith.constant 0 : i32
    return %arg0, %c0_i32, %arg1 : i32, i32, i32
  }
}

module attributes {stable_mosaic.version = 11 : i64} {
  func.func @moe_kernel(%arg0: i32, %arg1: i32, %arg2: memref<2xi32, #tpu.memory_space<smem>>, %arg3: memref<8xi32, #tpu.memory_space<smem>>, %arg4: memref<8xf32, #tpu.memory_space<smem>>, %arg5: memref<1x4x256xf32, #tpu.memory_space<vmem>>, %arg6: memref<4x4x4xbf16, #tpu.memory_space<vmem>>, %arg7: memref<1x4x1xf32, #tpu.memory_space<vmem>>, %arg8: memref<1x4x256xf32, #tpu.memory_space<vmem>>, %arg9: memref<4x256xf32, #tpu.memory_space<vmem>>) attributes {dimension_semantics = [#tpu.dimension_semantics<parallel>, #tpu.dimension_semantics<parallel>], iteration_bounds = array<i64: 2, 1>, scalar_prefetch = 3 : i64, scratch_operands = 1 : i64, tpu.core_type = #tpu.core_type<tc>, window_params = [{transform_indices = @transform_0, window_bounds = array<i64: 1, 4, 256>}, {pipeline_mode = #tpu.pipeline_mode<synchronous>, transform_indices = @transform_1, window_bounds = array<i64: 4, 4, 4>}, {transform_indices = @transform_2, window_bounds = array<i64: 1, 4, 1>}, {transform_indices = @transform_3, window_bounds = array<i64: 1, 4, 256>}]} {
    %c0 = arith.constant 0 : index
    %c0_0 = arith.constant 0 : index
    %c0_1 = arith.constant 0 : index
    %0 = vector.load %arg7[%c0, %c0_0, %c0_1] : memref<1x4x1xf32, #tpu.memory_space<vmem>>, vector<1x4x1xf32>
    %1 = vector.shape_cast %0 : vector<1x4x1xf32> to vector<4x1xf32>
    %2 = vector.shape_cast %1 : vector<4x1xf32> to vector<4x1xf32>
    %3 = vector.broadcast %2 : vector<4x1xf32> to vector<4x256xf32>
    %c0_2 = arith.constant 0 : index
    %c0_3 = arith.constant 0 : index
    %4 = vector.load %arg9[%c0_2, %c0_3] : memref<4x256xf32, #tpu.memory_space<vmem>>, vector<4x256xf32>
    tpu.vector_store %arg9[%c0_2, %c0_3], %3 {strides = array<i32>} : memref<4x256xf32, #tpu.memory_space<vmem>>, vector<4x256xf32>,
    %c0_4 = arith.constant 0 : index
    %c0_5 = arith.constant 0 : index
    %c0_6 = arith.constant 0 : index
    %5 = vector.load %arg5[%c0_4, %c0_5, %c0_6] : memref<1x4x256xf32, #tpu.memory_space<vmem>>, vector<1x4x256xf32>
    %6 = vector.shape_cast %5 : vector<1x4x256xf32> to vector<4x256xf32>
    %7 = arith.truncf %6 : vector<4x256xf32> to vector<4x256xbf16>
    %8 = arith.index_cast %arg0 : i32 to index
    %9 = memref.load %arg2[%8] : memref<2xi32, #tpu.memory_space<smem>>
    %c0_i32 = arith.constant 0 : i32
    %c0_i32_7 = arith.constant 0 : i32
    %10 = arith.subi %9, %c0_i32_7 : i32
    %11 = arith.addi %c0_i32_7, %10 : i32
    %c1_i32 = arith.constant 1 : i32
    scf.for %arg10 = %c0_i32_7 to %11 step %c1_i32  : i32 {
      %c4_i32 = arith.constant 4 : i32
      %16 = arith.muli %arg0, %c4_i32 : i32
      %17 = arith.addi %16, %arg10 : i32
      %18 = arith.index_cast %17 : i32 to index
      %19 = memref.load %arg3[%18] : memref<8xi32, #tpu.memory_space<smem>>
      %c4_i32_13 = arith.constant 4 : i32
      %20 = arith.muli %arg0, %c4_i32_13 : i32
      %21 = arith.addi %20, %arg10 : i32
      %22 = arith.index_cast %21 : i32 to index
      %23 = memref.load %arg4[%22] : memref<8xf32, #tpu.memory_space<smem>>
      %24 = arith.index_cast %19 : i32 to index
      %c0_14 = arith.constant 0 : index
      %c0_15 = arith.constant 0 : index
      %25 = vector.load %arg6[%24, %c0_14, %c0_15] : memref<4x4x4xbf16, #tpu.memory_space<vmem>>, vector<1x4x4xbf16>
      %26 = vector.shape_cast %25 : vector<1x4x4xbf16> to vector<4x4xbf16>
      %27 = arith.extf %26 : vector<4x4xbf16> to vector<4x4xf32>
      %28 = vector.broadcast %23 : f32 to vector<4x4xf32>
      %29 = arith.mulf %27, %28 : vector<4x4xf32>
      %30 = arith.truncf %29 : vector<4x4xf32> to vector<4x4xbf16>
      %c0_16 = arith.constant 0 : index
      %c0_17 = arith.constant 0 : index
      %31 = vector.load %arg9[%c0_16, %c0_17] : memref<4x256xf32, #tpu.memory_space<vmem>>, vector<4x256xf32>
      %cst = arith.constant dense<0.000000e+00> : vector<4x256xf32>
      %32 = tpu.matmul %30, %7, %cst {dimension_numbers = #tpu.dot_dimension_numbers<[1], [0], [0], [1], [0, 0, 1, 1], [], []>} : vector<4x4xbf16>, vector<4x256xbf16>, vector<4x256xf32> -> vector<4x256xf32>
      %33 = arith.addf %31, %32 : vector<4x256xf32>
      %c0_18 = arith.constant 0 : index
      %c0_19 = arith.constant 0 : index
      %34 = vector.load %arg9[%c0_18, %c0_19] : memref<4x256xf32, #tpu.memory_space<vmem>>, vector<4x256xf32>
      tpu.vector_store %arg9[%c0_18, %c0_19], %33 {strides = array<i32>} : memref<4x256xf32, #tpu.memory_space<vmem>>, vector<4x256xf32>,
    }
    %c0_8 = arith.constant 0 : index
    %c0_9 = arith.constant 0 : index
    %12 = vector.load %arg9[%c0_8, %c0_9] : memref<4x256xf32, #tpu.memory_space<vmem>>, vector<4x256xf32>
    %c0_10 = arith.constant 0 : index
    %c0_11 = arith.constant 0 : index
    %c0_12 = arith.constant 0 : index
    %13 = vector.load %arg8[%c0_10, %c0_11, %c0_12] : memref<1x4x256xf32, #tpu.memory_space<vmem>>, vector<1x4x256xf32>
    %14 = vector.shape_cast %13 : vector<1x4x256xf32> to vector<4x256xf32>
    %15 = vector.shape_cast %12 : vector<4x256xf32> to vector<1x4x256xf32>
    tpu.vector_store %arg8[%c0_10, %c0_11, %c0_12], %15 {strides = array<i32>} : memref<1x4x256xf32, #tpu.memory_space<vmem>>, vector<1x4x256xf32>,
    return
  }
  func.func @transform_0(%arg0: i32, %arg1: i32, %arg2: memref<2xi32, #tpu.memory_space<smem>>, %arg3: memref<8xi32, #tpu.memory_space<smem>>, %arg4: memref<8xf32, #tpu.memory_space<smem>>) -> (i32, i32, i32) {
    %c0_i32 = arith.constant 0 : i32
    %c0_i32_0 = arith.constant 0 : i32
    return %arg0, %c0_i32, %arg1 : i32, i32, i32
  }
  func.func @transform_1(%arg0: i32, %arg1: i32, %arg2: memref<2xi32, #tpu.memory_space<smem>>, %arg3: memref<8xi32, #tpu.memory_space<smem>>, %arg4: memref<8xf32, #tpu.memory_space<smem>>) -> (i32, i32, i32) {
    %c0_i32 = arith.constant 0 : i32
    %c0_i32_0 = arith.constant 0 : i32
    %c0_i32_1 = arith.constant 0 : i32
    %c0_i32_2 = arith.constant 0 : i32
    return %c0_i32, %c0_i32_0, %c0_i32_1 : i32, i32, i32
  }
  func.func @transform_2(%arg0: i32, %arg1: i32, %arg2: memref<2xi32, #tpu.memory_space<smem>>, %arg3: memref<8xi32, #tpu.memory_space<smem>>, %arg4: memref<8xf32, #tpu.memory_space<smem>>) -> (i32, i32, i32) {
    %c0_i32 = arith.constant 0 : i32
    %c0_i32_0 = arith.constant 0 : i32
    %c0_i32_1 = arith.constant 0 : i32
    return %arg0, %c0_i32, %c0_i32_0 : i32, i32, i32
  }
  func.func @transform_3(%arg0: i32, %arg1: i32, %arg2: memref<2xi32, #tpu.memory_space<smem>>, %arg3: memref<8xi32, #tpu.memory_space<smem>>, %arg4: memref<8xf32, #tpu.memory_space<smem>>) -> (i32, i32, i32) {
    %c0_i32 = arith.constant 0 : i32
    %c0_i32_0 = arith.constant 0 : i32
    return %arg0, %c0_i32, %arg1 : i32, i32, i32
  }
}

</mosaic_0001>

<bundles_post_ra>
// kernel: tpu_custom_call.1
= control target key start
LH: loop header
LB: loop body
LE: loop exit
PB: predicated region body
PF: predicated region fallthrough
CT: control target
= control target key end

     0   :  { %s863_s0 = inlined_call_operand.vmem [shape: s32[2], index: 0, kind: input, shape index: {}]   ;;  %s864_s3 = inlined_call_operand.vmem [shape: f32[2,4,256], index: 3, kind: input, shape index: {}]   ;;  %s865_s4 = inlined_call_operand.vmem [shape: bf16[4,4,4], index: 4, kind: input, shape index: {}]   ;;  %s866_s5 = inlined_call_operand.vmem [shape: f32[2,4,1], index: 5, kind: input, shape index: {}]   ;;  %s867_s6 = inlined_call_operand.hbm [shape: f32[2,4,256], index: 6, kind: output, shape index: {}]   ;;  %s868_s1 = inlined_call_operand.hbm [shape: s32[8], index: 1, kind: input, shape index: {}]   ;;  %s869_s2 = inlined_call_operand.hbm [shape: f32[8], index: 2, kind: input, shape index: {}]  }
   0x1   :  { %s11_s23 = sshll.u32 %s863_s0, 4  ;;  %s12_s23 = int_to_ptr.vmem [resolvable:$true] %s11_s23 }
   0x2   :  { %s534_s24 = scalar_lea.vmem %s12_s23, 16  ;;  %p539_p1 = scmp.lt.s32.totalorder %s12_s23, %s12_s23 }
   0x3   :  { %p535_p0 = scmp.ne.s32.totalorder %s12_s23, %s534_s24  ;;  %p540_p2 = scmp.lt.s32.totalorder %s534_s24, %s534_s24 }
   0x5   :  { %p541_p3 = por %p540_p2, %p539_p1 }
   0x7   :  { %p542_p4 = pnand %p541_p3, %p535_p0 }
   0x9   :  { %545 = shalt.err (!%p542_p4)  }
   0xa   :  { %s656_s25 = smov [#allocation4]   ;;  %s546_s28 = scalar_lea.hbm %s868_s1, 16 }
   0xb   :  { %14 = dma.vmem_to_smem %s12_s23, 16, %s656_s25, [#allocation3] }
   0xc   :  { %p547_p5 = scmp.ne.s32.totalorder %s868_s1, %s546_s28  ;;  %p550_p6 = scmp.lt.u32.totalorder %s546_s28, %s868_s1 }
   0xe   :  { %p552_p7 = pnand %p550_p6, %p547_p5 }
  0x10   :  { %555 = shalt.err (!%p552_p7)  }
  0x11   :  { %s657_s8 = smov [#allocation5]   ;;  %s556_s13 = scalar_lea.hbm %s869_s2, 16 }
  0x12   :  { %16 = dma.hbm_to_smem %s868_s1, 16, %s657_s8, [#allocation3] }
  0x13   :  { %p557_p8 = scmp.ne.s32.totalorder %s869_s2, %s556_s13  ;;  %p560_p9 = scmp.lt.u32.totalorder %s556_s13, %s869_s2 }
  0x15   :  { %p562_p10 = pnand %p560_p9, %p557_p8 }
  0x17   :  { %565 = shalt.err (!%p562_p10)  }
  0x18   :  { %s658_s18 = smov [#allocation6]  }
  0x19   :  { %18 = dma.hbm_to_smem %s869_s2, 16, %s658_s18, [#allocation3] }
  0x1a   :  { %622 = dma.done.wait [#allocation3], 48 }
  0x1b   :  { %623 = vsyncadd [#allocation3], 4294967248 }
  0x1c   :  { %20 = sfence }
  0x1d   :  { %21 = vsyncpa [#allocation8], 0 }
  0x1e   :  { %23 = vsyncpa [#allocation8 + $0x1], 0  ;;  %s725_s1 = smov 0   ;;  %s727_s21 = smov 0  }
  0x1f   :  { %s729_s22 = smov 0   ;;  %s731_s23 = smov 0  }
  0x20   :  { %s733_s24 = smov 0   ;;  %s735_s25 = smov 0  }
  0x21 LB: > { %s442_s2 = sadd.s32 4294967295, %s650_s25   ;;  %s443_s26 = sadd.s32 4294967294, %s650_s25   ;;  %s650_s25 = sphi %s735_s25, %s29_s25   ;;  %s646_s24 = sphi %s733_s24, %s876_s24   ;;  %s642_s23 = sphi %s731_s23, %s875_s23   ;;  %s638_s22 = sphi %s729_s22, %s874_s22   ;;  %s634_s21 = sphi %s727_s21, %s873_s21   ;;  %s630_s1 = sphi %s725_s1, %s872_s1  }
  0x22   : > { %s41_s27 = sadd.s32 1, %s646_s24  ;;  %s125_s28 = sadd.s32 1, %s638_s22 }
  0x23   : > { %p43_p11 = scmp.ge.s32.totalorder %s41_s27, 2  ;;  %p135_p12 = scmp.ne.s32.totalorder %s638_s22, %s634_s21 }
  0x24   : > { %p136_p13 = scmp.eq.s32.totalorder %s442_s2, 1  ;;  %p141_p0 = scmp.ne.s32.totalorder %s634_s21, %s630_s1 }
  0x25   : > { %s878_s27 = smov (%p43_p11, %s41_s27), 0  ;;  %p142_p2 = scmp.eq.s32.totalorder %s443_s26, 1 }
  0x26   : > { %p765_p1 = por %p136_p13, %p135_p12  ;;  %s120_s30 = ssub.s32 %s646_s24, %s878_s27 }
  0x27   : > { %p446_p3 = scmp.ge.s32.totalorder %s650_s25, 1  ;;  %p123_p4 = scmp.eq.s32.totalorder %s120_s30, 0 }
  0x28   : > { %p772_p5 = por %p142_p2, %p141_p0  ;;  %p183_p6 = scmp.lt.s32.totalorder %s650_s25, 3 }
  0x29   : > { %s778_s0 = scalar_select %p123_p4, %s638_s22, %s125_s28  }
  0x2a   : > { %p184_p7 = pnand %p446_p3, %p183_p6 }
  0x2b   : > { %p216_p8 = scmp.lt.s32.totalorder (!%p184_p7), %s642_s23, 1  ;;  %v659_v0 = vmov (!%p184_p7), 0   ;;  %s212_s17 = sand.u32 (!%p184_p7), 1, %s634_s21   ;;  %v660_v6 = vmov (!%p184_p7), 839922192   ;;  %v239_v8 = vlaneseq (!%p184_p7) }
  0x2c   : > { %187 = sbr.rel (%p184_p7) target bundleno = 446 (0x1be), region = 32  ;;  %532 = vset.pattern.permute.xlu0 (!%p184_p7), %v659_v0  ;;  %s791_s18 = sshll.u32 (!%p184_p7), %s212_s17, 3  ;;  %v237_v7 = vunpack.c.l.s4 (!%p184_p7), %v660_v6 }
  0x2d   : > { %s794_s19 = sld [smem:[#allocation4 + %s642_s23]] (!%p184_p7)  ;;  %v240_v10 = vshrl.u32 (!%p184_p7), %v239_v8, 7  ;;  %s214_s20 = scalar_lea.vmem (!%p184_p7), [#allocation7], %s791_s18 }
  0x2e   : > { %v238_v9 = vunpack.c.0.s8 (!%p184_p7), %v237_v7 }
  0x30   : > { %v241_v11 = vsub.s32 (!%p184_p7), %v238_v9, %v240_v10 }
  0x33   : > { %s217_s8 = scalar_select %p216_p8, %s642_s23, 1 }
  0x34   : > { %p451_p9 = scmp.le.s32.totalorder %s794_s19, 0 }
  0x35   : > { %s450_s9 = sshll.u32 %s217_s8, 2  ;;  %s461_s10 = sshll.u32 %s217_s8, 3 }
  0x36   : > { %s228_s13 = scalar_lea.vmem %s866_s5, %s450_s9  ;;  %s223_s16 = scalar_lea.vmem %s864_s3, %s461_s10 }
  0x37   : > { %v231_v1 = vld [vmem:[%s228_s13] sm:$0xf]  ;;  %s798_s2 = smov (!%p451_p9), 0  }
  0x38   : > { %v245_v2 = vld [vmem:[%s223_s16] sm:$0xff]  ;;  %234 = vperm.xlu0 %532, %v231_v1  }
  0x39   : > { %v247_v3 = vcombine.high %v245_v2, %v245_v2  ;;  %v249_v4 = vpack.c.bf16 %v245_v2, %v245_v2 }
  0x3b   : > { %v250_v5 = vpack.c.bf16 %v247_v3, %v247_v3 }
  0xb4   : > { %404 = sbr.rel (%p451_p9) target bundleno = 422 (0x1a6), region = 72 }
  0xb7   : > { %v235_v12 = vpop.permute.xlu0 %234 }
  0xb8   : > { %v242_v13 = vrot.slane %v235_v12, %v241_v11 }
  0xba   : > { %244 = vst [vmem:[#allocation2] sm:$0xff] %v242_v13 }
  0xbb LB: >> { %vm274_vm0 = vcmask 1041408   ;;  %s452_s26 = sshll.u32 %s642_s23, 2  ;;  %v661_v15 = vmov 0   ;;  %vm270_vm1 = vcmask 31744   ;;  %s654_s2 = sphi %s798_s2, %s255_s2  }
  0xbc   : >> { %454 = vmatprep.subr.msk.bf16.mxu0 %vm274_vm0, %v250_v5  ;;  %v276_v14 = vsel %vm274_vm0, %v249_v4, 0  ;;  %313 = vmatprep.mubr.bf16.mxu0 %v661_v15  ;;  %s259_s28 = sadd.s32 %s654_s2, %s452_s26  ;;  %s255_s2 = sadd.s32 1, %s654_s2  }
  0xbd   : >> { %282 = vmatpush1.bf16.msra.mxu0 %v276_v14  ;;  %s260_s30 = sld [smem:[#allocation5 + %s259_s28]]  ;;  %p254_p10 = scmp.ge.s32.totalorder %s255_s2, %s794_s19 }
  0xbe   : >> { %s261_s8 = sld [smem:[#allocation6 + %s259_s28]] }
  0xc1   : >> { %v269_v22 = vld [vmem:[#allocation2] sm:$0xff] }
  0xc3   : >> { %s453_s9 = sshll.u32 %s260_s30, 1 }
  0xc4   : >> { %s263_s12 = scalar_lea.vmem %s865_s4, %s453_s9  ;;  %v266_v17 = vstv %s261_s8 }
  0xc5   : >> { %v264_v16 = vld [vmem:[%s263_s12] sm:$0x3] }
  0xc6   : >> { %v265_v18 = vunpack.c.l.bf16 %v264_v16 }
  0xc8   : >> { %v267_v19 = vmul.f32 %v266_v17, %v265_v18 }
  0xca   : >> { %v268_v20 = vpack.c.bf16 %v267_v19, %v267_v19 }
  0xcc   : >> { %455 = vmatmul.mubr.msk.bf16.vlgmr.msra.gmra.mrb[0].mxu0 %vm270_vm1, %v268_v20 }
 0x19f   : >> { %v315_v21 = vpop.f32.mrb[0].mxu0  ;;  %257 = sbr.rel (!%p254_p10) target bundleno = 187 (0xbb), region = 78 }
 0x1a0   : >> { %v317_v23 = vpop.f32.mrb[1].mxu0 }
 0x1a1   : >> { %v324_v24 = vcombine.low %v315_v21, %v317_v23  ;;  %v319_v25 = vpop.f32.mrb[2].mxu0 }
 0x1a2   : >> { %v320_v26 = vpop.f32.mrb[3].mxu0 }
 0x1a3   : >> { %v326_v27 = vadd.f32 %v324_v24, %v269_v22 }
 0x1a5   : >> { %327 = vst [vmem:[#allocation2] sm:$0xff] %v326_v27 }
 0x1a6 PF: > { %s462_s13 = sshll.u32 %s642_s23, 7  ;;  %s347_s26 = sshll.u32 %s214_s20, 4  ;;  %s348_s26 = int_to_ptr.vmem [resolvable:$true] %s347_s26 }
 0x1a7   : > { %s818_s16 = scalar_lea.hbm %s867_s6, %s462_s13  ;;  %s331_s2 = scalar_lea.sflag [#allocation8], %s212_s17 }
 0x1a8   : > { %s566_s19 = scalar_lea.vmem %s348_s26, 128  ;;  %s662_s28 = smov [#allocation7]  }
 0x1a9   : > { %p567_p11 = scmp.ne.s32.totalorder %s348_s26, %s566_s19  ;;  %s570_s30 = sshll.u32 %s662_s28, 4  ;;  %s571_s30 = int_to_ptr.vmem [resolvable:$false] %s570_s30 }
 0x1aa   : > { %s572_s23 = scalar_lea.vmem %s571_s30, 256  ;;  %p573_p0 = scmp.lt.s32.totalorder %s348_s26, %s571_s30 }
 0x1ab   : > { %p568_p12 = pnand %p567_p11, %p765_p1  ;;  %p574_p2 = scmp.lt.s32.totalorder %s572_s23, %s566_s19 }
 0x1ac   : > { %v328_v28 = vld [vmem:[#allocation2] sm:$0xff] }
 0x1ad   : > { %329 = vst [vmem:[%s214_s20] sm:$0xff] %v328_v28  ;;  %p569_p13 = pneg %p568_p12  ;;  %p575_p3 = por %p574_p2, %p573_p0 }
 0x1af   : > { %p576_p4 = pnand %p575_p3, %p569_p13 }
 0x1b1   : > { %579 = shalt.err (!%p576_p4)
}
 0x1b2   : > { %s580_s17 = scalar_lea.hbm %s818_s16, 128  ;;  %s584_s8 = scalar_lea.hbm %s867_s6, 256 }
 0x1b3   : > { %p581_p6 = scmp.ne.s32.totalorder %s818_s16, %s580_s17  ;;  %p585_p9 = scmp.lt.u32.totalorder %s818_s16, %s867_s6 }
 0x1b4   : > { %p586_p10 = scmp.lt.u32.totalorder %s584_s8, %s580_s17  ;;  %p588_p12 = scmp.lt.u32.totalorder %s580_s17, %s818_s16 }
 0x1b5   : > { %p582_p7 = pnand %p581_p6, %p765_p1 }
 0x1b6   : > { %p587_p11 = por %p586_p10, %p585_p9 }
 0x1b7   : > { %p583_p8 = pneg %p582_p7 }
 0x1b8   : > { %p589_p13 = por %p588_p12, %p587_p11 }
 0x1ba   : > { %p590_p0 = pnand %p589_p13, %p583_p8 }
 0x1bc   : > { %593 = shalt.err (!%p590_p0)
}
 0x1bd   : > { %463 = dma.vmem_to_hbm [thread:$0]  (%p765_p1), %s348_s26, 128, %s818_s16, %s331_s2  }
 0x1be PF: > { %p469_p2 = scmp.ge.s32.totalorder %s650_s25, 2  ;;  %s359_s11 = sand.u32 1, %s630_s1  }
 0x1bf   : > { %s360_s12 = scalar_lea.sflag [#allocation8], %s359_s11 }
 0x1c0   : > { %p466_p3 = pnand %p469_p2, %p772_p5 }
 0x1c2   : > { %625 = dma.done.wait (!%p466_p3), %s360_s12, 128  }
 0x1c3   : > { %627 = vsyncadd (!%p466_p3), %s360_s12, 4294967168  ;;  %s29_s25 = sadd.s32 1, %s650_s25   ;;  %s872_s1 = smov %s634_s21 }
 0x1c4   : > { %p26_p4 = scmp.ge.s32.totalorder %s29_s25, 4   ;;  %s873_s21 = smov %s638_s22 }
 0x1c5   : > { %s874_s22 = smov %s778_s0  ;;  %s875_s23 = smov %s646_s24 }
 0x1c6   : > { %s876_s24 = smov %s878_s27  ;;  %28 = sbr.rel (!%p26_p4) target bundleno = 33 (0x21), region = 89 }
 0x1cd   :  { %365 = vsyncpa [#allocation8], 1 }
 0x1ce   :  { %367 = vsyncpa [#allocation8 + $0x1], 1 }

// kernel: tpu_custom_call.1
= control target key start
LH: loop header
LB: loop body
LE: loop exit
PB: predicated region body
PF: predicated region fallthrough
CT: control target
= control target key end

     0   :  { %s863_s0 = inlined_call_operand.vmem [shape: s32[2], index: 0, kind: input, shape index: {}]   ;;  %s864_s3 = inlined_call_operand.vmem [shape: f32[2,4,256], index: 3, kind: input, shape index: {}]   ;;  %s865_s4 = inlined_call_operand.vmem [shape: bf16[4,4,4], index: 4, kind: input, shape index: {}]   ;;  %s866_s5 = inlined_call_operand.vmem [shape: f32[2,4,1], index: 5, kind: input, shape index: {}]   ;;  %s867_s6 = inlined_call_operand.hbm [shape: f32[2,4,256], index: 6, kind: output, shape index: {}]   ;;  %s868_s1 = inlined_call_operand.hbm [shape: s32[8], index: 1, kind: input, shape index: {}]   ;;  %s869_s2 = inlined_call_operand.hbm [shape: f32[8], index: 2, kind: input, shape index: {}]  }
   0x1   :  { %s11_s23 = sshll.u32 %s863_s0, 4  ;;  %s12_s23 = int_to_ptr.vmem [resolvable:$true] %s11_s23 }
   0x2   :  { %s534_s24 = scalar_lea.vmem %s12_s23, 16  ;;  %p539_p1 = scmp.lt.s32.totalorder %s12_s23, %s12_s23 }
   0x3   :  { %p535_p0 = scmp.ne.s32.totalorder %s12_s23, %s534_s24  ;;  %p540_p2 = scmp.lt.s32.totalorder %s534_s24, %s534_s24 }
   0x5   :  { %p541_p3 = por %p540_p2, %p539_p1 }
   0x7   :  { %p542_p4 = pnand %p541_p3, %p535_p0 }
   0x9   :  { %545 = shalt.err (!%p542_p4)  }
   0xa   :  { %s656_s25 = smov [#allocation4]   ;;  %s546_s28 = scalar_lea.hbm %s868_s1, 16 }
   0xb   :  { %14 = dma.vmem_to_smem %s12_s23, 16, %s656_s25, [#allocation3] }
   0xc   :  { %p547_p5 = scmp.ne.s32.totalorder %s868_s1, %s546_s28  ;;  %p550_p6 = scmp.lt.u32.totalorder %s546_s28, %s868_s1 }
   0xe   :  { %p552_p7 = pnand %p550_p6, %p547_p5 }
  0x10   :  { %555 = shalt.err (!%p552_p7)  }
  0x11   :  { %s657_s8 = smov [#allocation5]   ;;  %s556_s13 = scalar_lea.hbm %s869_s2, 16 }
  0x12   :  { %16 = dma.hbm_to_smem %s868_s1, 16, %s657_s8, [#allocation3] }
  0x13   :  { %p557_p8 = scmp.ne.s32.totalorder %s869_s2, %s556_s13  ;;  %p560_p9 = scmp.lt.u32.totalorder %s556_s13, %s869_s2 }
  0x15   :  { %p562_p10 = pnand %p560_p9, %p557_p8 }
  0x17   :  { %565 = shalt.err (!%p562_p10)  }
  0x18   :  { %s658_s18 = smov [#allocation6]  }
  0x19   :  { %18 = dma.hbm_to_smem %s869_s2, 16, %s658_s18, [#allocation3] }
  0x1a   :  { %622 = dma.done.wait [#allocation3], 48 }
  0x1b   :  { %623 = vsyncadd [#allocation3], 4294967248 }
  0x1c   :  { %20 = sfence }
  0x1d   :  { %21 = vsyncpa [#allocation8], 0 }
  0x1e   :  { %23 = vsyncpa [#allocation8 + $0x1], 0  ;;  %s725_s1 = smov 0   ;;  %s727_s21 = smov 0  }
  0x1f   :  { %s729_s22 = smov 0   ;;  %s731_s23 = smov 0  }
  0x20   :  { %s733_s24 = smov 0   ;;  %s735_s25 = smov 0  }
  0x21 LB: > { %s442_s2 = sadd.s32 4294967295, %s650_s25   ;;  %s443_s26 = sadd.s32 4294967294, %s650_s25   ;;  %s650_s25 = sphi %s735_s25, %s29_s25   ;;  %s646_s24 = sphi %s733_s24, %s876_s24   ;;  %s642_s23 = sphi %s731_s23, %s875_s23   ;;  %s638_s22 = sphi %s729_s22, %s874_s22   ;;  %s634_s21 = sphi %s727_s21, %s873_s21   ;;  %s630_s1 = sphi %s725_s1, %s872_s1  }
  0x22   : > { %s41_s27 = sadd.s32 1, %s646_s24  ;;  %s125_s28 = sadd.s32 1, %s638_s22 }
  0x23   : > { %p43_p11 = scmp.ge.s32.totalorder %s41_s27, 2  ;;  %p135_p12 = scmp.ne.s32.totalorder %s638_s22, %s634_s21 }
  0x24   : > { %p136_p13 = scmp.eq.s32.totalorder %s442_s2, 1  ;;  %p141_p0 = scmp.ne.s32.totalorder %s634_s21, %s630_s1 }
  0x25   : > { %s878_s27 = smov (%p43_p11, %s41_s27), 0  ;;  %p142_p2 = scmp.eq.s32.totalorder %s443_s26, 1 }
  0x26   : > { %p765_p1 = por %p136_p13, %p135_p12  ;;  %s120_s30 = ssub.s32 %s646_s24, %s878_s27 }
  0x27   : > { %p446_p3 = scmp.ge.s32.totalorder %s650_s25, 1  ;;  %p123_p4 = scmp.eq.s32.totalorder %s120_s30, 0 }
  0x28   : > { %p772_p5 = por %p142_p2, %p141_p0  ;;  %p183_p6 = scmp.lt.s32.totalorder %s650_s25, 3 }
  0x29   : > { %s778_s0 = scalar_select %p123_p4, %s638_s22, %s125_s28  }
  0x2a   : > { %p184_p7 = pnand %p446_p3, %p183_p6 }
  0x2b   : > { %p216_p8 = scmp.lt.s32.totalorder (!%p184_p7), %s642_s23, 1  ;;  %v659_v0 = vmov (!%p184_p7), 0   ;;  %s212_s17 = sand.u32 (!%p184_p7), 1, %s634_s21   ;;  %v660_v6 = vmov (!%p184_p7), 839922192   ;;  %v239_v8 = vlaneseq (!%p184_p7) }
  0x2c   : > { %187 = sbr.rel (%p184_p7) target bundleno = 446 (0x1be), region = 32  ;;  %532 = vset.pattern.permute.xlu0 (!%p184_p7), %v659_v0  ;;  %s791_s18 = sshll.u32 (!%p184_p7), %s212_s17, 3  ;;  %v237_v7 = vunpack.c.l.s4 (!%p184_p7), %v660_v6 }
  0x2d   : > { %s794_s19 = sld [smem:[#allocation4 + %s642_s23]] (!%p184_p7)  ;;  %v240_v10 = vshrl.u32 (!%p184_p7), %v239_v8, 7  ;;  %s214_s20 = scalar_lea.vmem (!%p184_p7), [#allocation7], %s791_s18 }
  0x2e   : > { %v238_v9 = vunpack.c.0.s8 (!%p184_p7), %v237_v7 }
  0x30   : > { %v241_v11 = vsub.s32 (!%p184_p7), %v238_v9, %v240_v10 }
  0x33   : > { %s217_s8 = scalar_select %p216_p8, %s642_s23, 1 }
  0x34   : > { %p451_p9 = scmp.le.s32.totalorder %s794_s19, 0 }
  0x35   : > { %s450_s9 = sshll.u32 %s217_s8, 2  ;;  %s461_s10 = sshll.u32 %s217_s8, 3 }
  0x36   : > { %s228_s13 = scalar_lea.vmem %s866_s5, %s450_s9  ;;  %s223_s16 = scalar_lea.vmem %s864_s3, %s461_s10 }
  0x37   : > { %v231_v1 = vld [vmem:[%s228_s13] sm:$0xf]  ;;  %s798_s2 = smov (!%p451_p9), 0  }
  0x38   : > { %v245_v2 = vld [vmem:[%s223_s16] sm:$0xff]  ;;  %234 = vperm.xlu0 %532, %v231_v1  }
  0x39   : > { %v247_v3 = vcombine.high %v245_v2, %v245_v2  ;;  %v249_v4 = vpack.c.bf16 %v245_v2, %v245_v2 }
  0x3b   : > { %v250_v5 = vpack.c.bf16 %v247_v3, %v247_v3 }
  0xb4   : > { %404 = sbr.rel (%p451_p9) target bundleno = 422 (0x1a6), region = 72 }
  0xb7   : > { %v235_v12 = vpop.permute.xlu0 %234 }
  0xb8   : > { %v242_v13 = vrot.slane %v235_v12, %v241_v11 }
  0xba   : > { %244 = vst [vmem:[#allocation2] sm:$0xff] %v242_v13 }
  0xbb LB: >> { %vm274_vm0 = vcmask 1041408   ;;  %s452_s26 = sshll.u32 %s642_s23, 2  ;;  %v661_v15 = vmov 0   ;;  %vm270_vm1 = vcmask 31744   ;;  %s654_s2 = sphi %s798_s2, %s255_s2  }
  0xbc   : >> { %454 = vmatprep.subr.msk.bf16.mxu0 %vm274_vm0, %v250_v5  ;;  %v276_v14 = vsel %vm274_vm0, %v249_v4, 0  ;;  %313 = vmatprep.mubr.bf16.mxu0 %v661_v15  ;;  %s259_s28 = sadd.s32 %s654_s2, %s452_s26  ;;  %s255_s2 = sadd.s32 1, %s654_s2  }
  0xbd   : >> { %282 = vmatpush1.bf16.msra.mxu0 %v276_v14  ;;  %s260_s30 = sld [smem:[#allocation5 + %s259_s28]]  ;;  %p254_p10 = scmp.ge.s32.totalorder %s255_s2, %s794_s19 }
  0xbe   : >> { %s261_s8 = sld [smem:[#allocation6 + %s259_s28]] }
  0xc1   : >> { %v269_v22 = vld [vmem:[#allocation2] sm:$0xff] }
  0xc3   : >> { %s453_s9 = sshll.u32 %s260_s30, 1 }
  0xc4   : >> { %s263_s12 = scalar_lea.vmem %s865_s4, %s453_s9  ;;  %v266_v17 = vstv %s261_s8 }
  0xc5   : >> { %v264_v16 = vld [vmem:[%s263_s12] sm:$0x3] }
  0xc6   : >> { %v265_v18 = vunpack.c.l.bf16 %v264_v16 }
  0xc8   : >> { %v267_v19 = vmul.f32 %v266_v17, %v265_v18 }
  0xca   : >> { %v268_v20 = vpack.c.bf16 %v267_v19, %v267_v19 }
  0xcc   : >> { %455 = vmatmul.mubr.msk.bf16.vlgmr.msra.gmra.mrb[0].mxu0 %vm270_vm1, %v268_v20 }
 0x19f   : >> { %v315_v21 = vpop.f32.mrb[0].mxu0  ;;  %257 = sbr.rel (!%p254_p10) target bundleno = 187 (0xbb), region = 78 }
 0x1a0   : >> { %v317_v23 = vpop.f32.mrb[1].mxu0 }
 0x1a1   : >> { %v324_v24 = vcombine.low %v315_v21, %v317_v23  ;;  %v319_v25 = vpop.f32.mrb[2].mxu0 }
 0x1a2   : >> { %v320_v26 = vpop.f32.mrb[3].mxu0 }
 0x1a3   : >> { %v326_v27 = vadd.f32 %v324_v24, %v269_v22 }
 0x1a5   : >> { %327 = vst [vmem:[#allocation2] sm:$0xff] %v326_v27 }
 0x1a6 PF: > { %s462_s13 = sshll.u32 %s642_s23, 7  ;;  %s347_s26 = sshll.u32 %s214_s20, 4  ;;  %s348_s26 = int_to_ptr.vmem [resolvable:$true] %s347_s26 }
 0x1a7   : > { %s818_s16 = scalar_lea.hbm %s867_s6, %s462_s13  ;;  %s331_s2 = scalar_lea.sflag [#allocation8], %s212_s17 }
 0x1a8   : > { %s566_s19 = scalar_lea.vmem %s348_s26, 128  ;;  %s662_s28 = smov [#allocation7]  }
 0x1a9   : > { %p567_p11 = scmp.ne.s32.totalorder %s348_s26, %s566_s19  ;;  %s570_s30 = sshll.u32 %s662_s28, 4  ;;  %s571_s30 = int_to_ptr.vmem [resolvable:$false] %s570_s30 }
 0x1aa   : > { %s572_s23 = scalar_lea.vmem %s571_s30, 256  ;;  %p573_p0 = scmp.lt.s32.totalorder %s348_s26, %s571_s30 }
 0x1ab   : > { %p568_p12 = pnand %p567_p11, %p765_p1  ;;  %p574_p2 = scmp.lt.s32.totalorder %s572_s23, %s566_s19 }
 0x1ac   : > { %v328_v28 = vld [vmem:[#allocation2] sm:$0xff] }
 0x1ad   : > { %329 = vst [vmem:[%s214_s20] sm:$0xff] %v328_v28  ;;  %p569_p13 = pneg %p568_p12  ;;  %p575_p3 = por %p574_p2, %p573_p0 }
 0x1af   : > { %p576_p4 = pnand %p575_p3, %p569_p13 }
 0x1b1   : > { %579 = shalt.err (!%p576_p4)
}
 0x1b2   : > { %s580_s17 = scalar_lea.hbm %s818_s16, 128  ;;  %s584_s8 = scalar_lea.hbm %s867_s6, 256 }
 0x1b3   : > { %p581_p6 = scmp.ne.s32.totalorder %s818_s16, %s580_s17  ;;  %p585_p9 = scmp.lt.u32.totalorder %s818_s16, %s867_s6 }
 0x1b4   : > { %p586_p10 = scmp.lt.u32.totalorder %s584_s8, %s580_s17  ;;  %p588_p12 = scmp.lt.u32.totalorder %s580_s17, %s818_s16 }
 0x1b5   : > { %p582_p7 = pnand %p581_p6, %p765_p1 }
 0x1b6   : > { %p587_p11 = por %p586_p10, %p585_p9 }
 0x1b7   : > { %p583_p8 = pneg %p582_p7 }
 0x1b8   : > { %p589_p13 = por %p588_p12, %p587_p11 }
 0x1ba   : > { %p590_p0 = pnand %p589_p13, %p583_p8 }
 0x1bc   : > { %593 = shalt.err (!%p590_p0)
}
 0x1bd   : > { %463 = dma.vmem_to_hbm [thread:$0]  (%p765_p1), %s348_s26, 128, %s818_s16, %s331_s2  }
 0x1be PF: > { %p469_p2 = scmp.ge.s32.totalorder %s650_s25, 2  ;;  %s359_s11 = sand.u32 1, %s630_s1  }
 0x1bf   : > { %s360_s12 = scalar_lea.sflag [#allocation8], %s359_s11 }
 0x1c0   : > { %p466_p3 = pnand %p469_p2, %p772_p5 }
 0x1c2   : > { %625 = dma.done.wait (!%p466_p3), %s360_s12, 128  }
 0x1c3   : > { %627 = vsyncadd (!%p466_p3), %s360_s12, 4294967168  ;;  %s29_s25 = sadd.s32 1, %s650_s25   ;;  %s872_s1 = smov %s634_s21 }
 0x1c4   : > { %p26_p4 = scmp.ge.s32.totalorder %s29_s25, 4   ;;  %s873_s21 = smov %s638_s22 }
 0x1c5   : > { %s874_s22 = smov %s778_s0  ;;  %s875_s23 = smov %s646_s24 }
 0x1c6   : > { %s876_s24 = smov %s878_s27  ;;  %28 = sbr.rel (!%p26_p4) target bundleno = 33 (0x21), region = 89 }
 0x1cd   :  { %365 = vsyncpa [#allocation8], 1 }
 0x1ce   :  { %367 = vsyncpa [#allocation8 + $0x1], 1 }

</bundles_post_ra>
